<compile_context>
chip_gen: v7x
topology: tpu7x:2x2x1
jax: 0.10.0
libtpu: 0.0.40
codegen_flags: <defaults>
</compile_context>

<pallas_src>
import jax
import jax.numpy as jnp
from jax.experimental import pallas as pl
from jax.experimental.pallas import tpu as pltpu


def _cdiv(a, b):
    return -(-a // b)


def _round_up(x, m):
    return ((x + m - 1) // m) * m


# ----------------------------------------------------------------------------
# Kernel
# ----------------------------------------------------------------------------
def critic_kernel(x_ref,        # (tm, S+A)            f32  (cast to bf16 here)
                  w_in_ref,     # (S+A, size_1+size_2) bf16  [[W1t,0],[0,W2t_a]]
                  b1_ref,       # (1, size_1)          f32
                  w2t_h_ref,    # (size_1, size_2)     bf16
                  b2_ref,       # (1, size_2)          f32
                  w3_row_ref,   # (1, size_2)          f32
                  b3_ref,       # (1,)                 f32  (SMEM)
                  out_ref):     # (1, 1, tm)           f32  lane-dense row
    size_1 = b1_ref.shape[1]

    # --- fused dense_1 + action-path of dense_2: one (tm,S+A)@(S+A,2*256) ---
    x = x_ref[...].astype(jnp.bfloat16)                    # bf16 MXU operand
    y = jnp.dot(x, w_in_ref[...], preferred_element_type=jnp.float32)

    # dense_1 bias + relu (f32 VPU); action contribution to dense_2 pre-act.
    h1 = jnp.maximum(y[:, :size_1] + b1_ref[...], 0.0)
    act_contrib = y[:, size_1:]

    # --- dense_2 hidden path (MXU, bf16 operands, f32 accumulate) + relu ----
    h2 = jnp.dot(h1.astype(jnp.bfloat16), w2t_h_ref[...],
                 preferred_element_type=jnp.float32)
    h2 = jnp.maximum(h2 + act_contrib + b2_ref[...], 0.0)

    # --- dense_3 (size_2 -> 1): VPU multiply + XLU row reduction ------------
    q = jnp.sum(h2 * w3_row_ref[...], axis=-1) + b3_ref[0]  # (tm,)
    out_ref[...] = q.reshape(out_ref.shape).astype(out_ref.dtype)


# ----------------------------------------------------------------------------
# Wrapper
# ----------------------------------------------------------------------------
def critic_forward(state, action, kparams, *, max_tile=1024, min_steps=2):
    """Critic forward pass as a single Pallas call, tiled over the batch."""
    (w_in, b1, w2t_h, b2, w3_row, b3) = kparams
    B = state.shape[0]
    SA, width = w_in.shape                   # S+A, size_1+size_2
    size_1 = b1.shape[1]
    size_2 = b2.shape[1]

    # ---- batch tiling: big tiles, >=2 steps when B>=16 (v7x 2 TCs), minimal
    # padding (tm sized to the batch, only sublane-(8) aligned). -------------
    if B < 16:
        n_steps = 1
    else:
        n_steps = max(min_steps, _cdiv(B, max_tile))
    tm = _round_up(_cdiv(B, n_steps), 8)
    n_steps = _cdiv(B, tm)
    B_pad = n_steps * tm

    # Single concatenated input -> one input stream / one DMA per step.
    x = jnp.concatenate([state, action], axis=1)
    if B_pad != B:
        x = jnp.pad(x, ((0, B_pad - B), (0, 0)))

    const = lambda arr: pl.BlockSpec(arr.shape, lambda i, _n=arr.ndim: (0,) * _n)

    flops = 2 * B_pad * (SA * width + size_1 * size_2 + size_2)
    bytes_accessed = (x.size * 4                       # f32 input
                      + (w_in.size + w2t_h.size) * 2   # bf16 weights
                      + (b1.size + b2.size + w3_row.size + b3.size) * 4
                      + B_pad * 4)                     # f32 output

    out = pl.pallas_call(
        critic_kernel,
        out_shape=jax.ShapeDtypeStruct((n_steps, 1, tm), jnp.float32),
        grid_spec=pltpu.PrefetchScalarGridSpec(
            num_scalar_prefetch=0,
            grid=(n_steps,),
            in_specs=[
                pl.BlockSpec((tm, SA), lambda i: (i, 0)),   # x tile per step
                const(w_in),        # weights/biases: constant block index ->
                const(b1),          # stay VMEM-resident across grid steps
                const(w2t_h),
                const(b2),
                const(w3_row),
                pl.BlockSpec(memory_space=pltpu.MemorySpace.SMEM),  # b3 scalar
            ],
            # Lane-dense output row per step: unmasked stores + dense writeback.
            out_specs=pl.BlockSpec((1, 1, tm), lambda i: (i, 0, 0)),
        ),
        compiler_params=pltpu.CompilerParams(
            dimension_semantics=("parallel",),   # shard batch grid across TCs
            vmem_limit_bytes=32 * 1024 * 1024,
        ),
        cost_estimate=pl.CostEstimate(
            flops=flops, transcendentals=0, bytes_accessed=bytes_accessed),
    )(x, w_in, b1, w2t_h, b2, w3_row, b3)

    return out.reshape(B_pad, 1)[:B]


# ----------------------------------------------------------------------------
# Parameter construction
# ----------------------------------------------------------------------------
def init_critic_params(key, state_size, action_size, size_1=256, size_2=256):
    """Deterministic init mirroring the PyTorch module's reset_parameters.

    hidden_init uses layer.weight.size()[0] == out_features, so
    lim = 1/sqrt(out_features) for dense_1/dense_2; dense_3 uses +-3e-3.
    Biases keep PyTorch's default Linear init: U(-1/sqrt(in), 1/sqrt(in)).
    """
    ks = jax.random.split(key, 6)

    def uni(k, shape, lim):
        return jax.random.uniform(k, shape, jnp.float32, -lim, lim)

    lim1 = 1.0 / jnp.sqrt(jnp.float32(size_1))
    lim2 = 1.0 / jnp.sqrt(jnp.float32(size_2))

    # weights stored transposed (in, out)
    w1t = uni(ks[0], (state_size, size_1), lim1)
    b1 = uni(ks[1], (1, size_1), 1.0 / jnp.sqrt(jnp.float32(state_size)))

    w2t = uni(ks[2], (size_1 + action_size, size_2), lim2)
    w2t_h = w2t[:size_1]            # (size_1, size_2)
    w2t_a = w2t[size_1:]            # (action_size, size_2)
    b2 = uni(ks[3], (1, size_2),
             1.0 / jnp.sqrt(jnp.float32(size_1 + action_size)))

    w3_row = uni(ks[4], (1, size_2), 0.003)        # dense_3.weight as a row
    b3 = uni(ks[5], (1,), 1.0 / jnp.sqrt(jnp.float32(size_2)))

    return (w1t, b1, w2t_h, w2t_a, b2, w3_row, b3)


def prepare_critic_params(params):
    """Pack the logical (f32, torch-layout) params into the kernel layout."""
    (w1t, b1, w2t_h, w2t_a, b2, w3_row, b3) = params
    S, size_1 = w1t.shape
    A, size_2 = w2t_a.shape
    assert size_1 % 128 == 0, "in-kernel lane slice needs size_1 % 128 == 0"

    # Block-diagonal merged weight for x = [state|action]:
    #   x @ W_in = [ state @ W1t  |  action @ W2t_a ]   in a single MXU pass.
    w_in = jnp.zeros((S + A, size_1 + size_2), jnp.float32)
    w_in = w_in.at[:S, :size_1].set(w1t)
    w_in = w_in.at[S:, size_1:].set(w2t_a)

    return (w_in.astype(jnp.bfloat16),      # MXU operand
            b1.astype(jnp.float32),
            w2t_h.astype(jnp.bfloat16),     # MXU operand
            b2.astype(jnp.float32),
            w3_row.astype(jnp.float32),
            b3.astype(jnp.float32))


# ----------------------------------------------------------------------------
# References
# ----------------------------------------------------------------------------
def critic_reference(state, action, params):
    """Pure-JAX f32 reference matching the PyTorch forward exactly."""
    (w1t, b1, w2t_h, w2t_a, b2, w3_row, b3) = params
    h1 = jnp.maximum(state @ w1t + b1, 0.0)
    x = jnp.concatenate([h1, action], axis=1)
    w2t = jnp.concatenate([w2t_h, w2t_a], axis=0)
    h2 = jnp.maximum(x @ w2t + b2, 0.0)
    return h2 @ w3_row.T + b3


def critic_reference_mixed(state, action, kparams):
    """Reference mirroring the kernel's bf16-operand / f32-accumulate math."""
    (w_in, b1, w2t_h, b2, w3_row, b3) = kparams
    size_1 = b1.shape[1]
    x = jnp.concatenate([state, action], axis=1).astype(jnp.bfloat16)
    y = jnp.dot(x, w_in, preferred_element_type=jnp.float32)
    h1 = jnp.maximum(y[:, :size_1] + b1, 0.0)
    h2 = jnp.dot(h1.astype(jnp.bfloat16), w2t_h,
                 preferred_element_type=jnp.float32)
    h2 = jnp.maximum(h2 + y[:, size_1:] + b2, 0.0)
    return jnp.sum(h2 * w3_row, axis=-1, keepdims=True) + b3


# ----------------------------------------------------------------------------
# Demo / self-test
# ----------------------------------------------------------------------------
if __name__ == "__main__":
    state_size = 16
    action_size = 4

    key = jax.random.PRNGKey(0)
    k_params, k_data = jax.random.split(key)
    params = init_critic_params(k_params, state_size, action_size)
    kparams = prepare_critic_params(params)

    # Cover the tiny single-tile path (B=8) and a multi-tile grid with a
    # ragged tail (B=200 -> two 104-row tiles, only 8 padded rows).
    for B in (8, 200):
        ks, ka = jax.random.split(jax.random.fold_in(k_data, B))
        state = jax.random.normal(ks, (B, state_size), jnp.float32)
        action = jax.random.normal(ka, (B, action_size), jnp.float32)

        q = critic_forward(state, action, kparams)
        q = jax.block_until_ready(q)
        assert q.shape == (B, 1)

        # Tight check against a reference with identical precision choices.
        q_mixed = critic_reference_mixed(state, action, kparams)
        assert jnp.allclose(q, q_mixed, atol=5e-4, rtol=5e-4), (
            f"mixed-precision mismatch at B={B}: "
            f"{float(jnp.max(jnp.abs(q - q_mixed)))}")

        # Loose check against the full-f32 PyTorch-equivalent reference
        # (bf16 MXU operands introduce a small, expected deviation).
        q_f32 = critic_reference(state, action, params)
        assert jnp.allclose(q, q_f32, atol=1e-2, rtol=1e-2), (
            f"f32 reference mismatch at B={B}: "
            f"{float(jnp.max(jnp.abs(q - q_f32)))}")

    print("KERNEL_OK")
</pallas_src>

<mosaic_0001>
module attributes {stable_mosaic.version = 11 : i64} {
  func.func @critic_kernel(%arg0: i32, %arg1: memref<8x20xf32, #tpu.memory_space<vmem>>, %arg2: memref<20x512xbf16, #tpu.memory_space<vmem>>, %arg3: memref<1x256xf32, #tpu.memory_space<vmem>>, %arg4: memref<256x256xbf16, #tpu.memory_space<vmem>>, %arg5: memref<1x256xf32, #tpu.memory_space<vmem>>, %arg6: memref<1x256xf32, #tpu.memory_space<vmem>>, %arg7: memref<1xf32, #tpu.memory_space<smem>>, %arg8: memref<1x1x8xf32, #tpu.memory_space<vmem>>) attributes {dimension_semantics = [#tpu.dimension_semantics<parallel>], iteration_bounds = array<i64: 1>, scalar_prefetch = 0 : i64, scratch_operands = 0 : i64, tpu.core_type = #tpu.core_type<tc>, window_params = [{transform_indices = @transform_0, window_bounds = array<i64: 8, 20>}, {pipeline_mode = #tpu.pipeline_mode<synchronous>, transform_indices = @transform_1, window_bounds = array<i64: 20, 512>}, {pipeline_mode = #tpu.pipeline_mode<synchronous>, transform_indices = @transform_2, window_bounds = array<i64: 1, 256>}, {pipeline_mode = #tpu.pipeline_mode<synchronous>, transform_indices = @transform_3, window_bounds = array<i64: 256, 256>}, {pipeline_mode = #tpu.pipeline_mode<synchronous>, transform_indices = @transform_4, window_bounds = array<i64: 1, 256>}, {pipeline_mode = #tpu.pipeline_mode<synchronous>, transform_indices = @transform_5, window_bounds = array<i64: 1, 256>}, {transform_indices = @transform_6, window_bounds = array<i64: 1>}, {transform_indices = @transform_7, window_bounds = array<i64: 1, 1, 8>}]} {
    %c0 = arith.constant 0 : index
    %c0_0 = arith.constant 0 : index
    %0 = vector.load %arg1[%c0, %c0_0] : memref<8x20xf32, #tpu.memory_space<vmem>>, vector<8x20xf32>
    %1 = arith.truncf %0 : vector<8x20xf32> to vector<8x20xbf16>
    %c0_1 = arith.constant 0 : index
    %c0_2 = arith.constant 0 : index
    %2 = vector.load %arg2[%c0_1, %c0_2] : memref<20x512xbf16, #tpu.memory_space<vmem>>, vector<20x512xbf16>
    %cst = arith.constant dense<0.000000e+00> : vector<8x512xf32>
    %3 = tpu.matmul %1, %2, %cst {dimension_numbers = #tpu.dot_dimension_numbers<[1], [0], [0], [1], [0, 0, 1, 1], [], []>} : vector<8x20xbf16>, vector<20x512xbf16>, vector<8x512xf32> -> vector<8x512xf32>
    %4 = vector.extract_strided_slice %3 {offsets = [0, 0], sizes = [8, 256], strides = [1, 1]} : vector<8x512xf32> to vector<8x256xf32>
    %c0_3 = arith.constant 0 : index
    %c0_4 = arith.constant 0 : index
    %5 = vector.load %arg3[%c0_3, %c0_4] : memref<1x256xf32, #tpu.memory_space<vmem>>, vector<1x256xf32>
    %6 = vector.broadcast %5 : vector<1x256xf32> to vector<8x256xf32>
    %7 = arith.addf %4, %6 : vector<8x256xf32>
    %cst_5 = arith.constant 0.000000e+00 : f32
    %8 = vector.broadcast %cst_5 : f32 to vector<8x256xf32>
    %9 = arith.maximumf %7, %8 : vector<8x256xf32>
    %10 = vector.extract_strided_slice %3 {offsets = [0, 256], sizes = [8, 256], strides = [1, 1]} : vector<8x512xf32> to vector<8x256xf32>
    %11 = arith.truncf %9 : vector<8x256xf32> to vector<8x256xbf16>
    %c0_6 = arith.constant 0 : index
    %c0_7 = arith.constant 0 : index
    %12 = vector.load %arg4[%c0_6, %c0_7] : memref<256x256xbf16, #tpu.memory_space<vmem>>, vector<256x256xbf16>
    %cst_8 = arith.constant dense<0.000000e+00> : vector<8x256xf32>
    %13 = tpu.matmul %11, %12, %cst_8 {dimension_numbers = #tpu.dot_dimension_numbers<[1], [0], [0], [1], [0, 0, 1, 1], [], []>} : vector<8x256xbf16>, vector<256x256xbf16>, vector<8x256xf32> -> vector<8x256xf32>
    %14 = arith.addf %13, %10 : vector<8x256xf32>
    %c0_9 = arith.constant 0 : index
    %c0_10 = arith.constant 0 : index
    %15 = vector.load %arg5[%c0_9, %c0_10] : memref<1x256xf32, #tpu.memory_space<vmem>>, vector<1x256xf32>
    %16 = vector.broadcast %15 : vector<1x256xf32> to vector<8x256xf32>
    %17 = arith.addf %14, %16 : vector<8x256xf32>
    %cst_11 = arith.constant 0.000000e+00 : f32
    %18 = vector.broadcast %cst_11 : f32 to vector<8x256xf32>
    %19 = arith.maximumf %17, %18 : vector<8x256xf32>
    %c0_12 = arith.constant 0 : index
    %c0_13 = arith.constant 0 : index
    %20 = vector.load %arg6[%c0_12, %c0_13] : memref<1x256xf32, #tpu.memory_space<vmem>>, vector<1x256xf32>
    %21 = vector.broadcast %20 : vector<1x256xf32> to vector<8x256xf32>
    %22 = arith.mulf %19, %21 : vector<8x256xf32>
    %cst_14 = arith.constant dense<0.000000e+00> : vector<8xf32>
    %23 = vector.multi_reduction <add>, %22, %cst_14 [1] : vector<8x256xf32> to vector<8xf32>
    %c0_15 = arith.constant 0 : index
    %24 = memref.load %arg7[%c0_15] : memref<1xf32, #tpu.memory_space<smem>>
    %25 = vector.broadcast %24 : f32 to vector<8xf32>
    %26 = arith.addf %23, %25 : vector<8xf32>
    %27 = vector.shape_cast %26 : vector<8xf32> to vector<1x1x8xf32>
    %c0_16 = arith.constant 0 : index
    %c0_17 = arith.constant 0 : index
    %c0_18 = arith.constant 0 : index
    %28 = vector.load %arg8[%c0_16, %c0_17, %c0_18] : memref<1x1x8xf32, #tpu.memory_space<vmem>>, vector<1x1x8xf32>
    tpu.vector_store %arg8[%c0_16, %c0_17, %c0_18], %27 {strides = array<i32>} : memref<1x1x8xf32, #tpu.memory_space<vmem>>, vector<1x1x8xf32>,
    return
  }
  func.func @transform_0(%arg0: i32) -> (i32, i32) {
    %c0_i32 = arith.constant 0 : i32
    %c0_i32_0 = arith.constant 0 : i32
    return %arg0, %c0_i32 : i32, i32
  }
  func.func @transform_1(%arg0: i32) -> (i32, i32) {
    %c0_i32 = arith.constant 0 : i32
    %c0_i32_0 = arith.constant 0 : i32
    %c0_i32_1 = arith.constant 0 : i32
    return %c0_i32, %c0_i32_0 : i32, i32
  }
  func.func @transform_2(%arg0: i32) -> (i32, i32) {
    %c0_i32 = arith.constant 0 : i32
    %c0_i32_0 = arith.constant 0 : i32
    %c0_i32_1 = arith.constant 0 : i32
    return %c0_i32, %c0_i32_0 : i32, i32
  }
  func.func @transform_3(%arg0: i32) -> (i32, i32) {
    %c0_i32 = arith.constant 0 : i32
    %c0_i32_0 = arith.constant 0 : i32
    %c0_i32_1 = arith.constant 0 : i32
    return %c0_i32, %c0_i32_0 : i32, i32
  }
  func.func @transform_4(%arg0: i32) -> (i32, i32) {
    %c0_i32 = arith.constant 0 : i32
    %c0_i32_0 = arith.constant 0 : i32
    %c0_i32_1 = arith.constant 0 : i32
    return %c0_i32, %c0_i32_0 : i32, i32
  }
  func.func @transform_5(%arg0: i32) -> (i32, i32) {
    %c0_i32 = arith.constant 0 : i32
    %c0_i32_0 = arith.constant 0 : i32
    %c0_i32_1 = arith.constant 0 : i32
    return %c0_i32, %c0_i32_0 : i32, i32
  }
  func.func @transform_6(%arg0: i32) -> i32 {
    %c0_i32 = arith.constant 0 : i32
    %c0_i32_0 = arith.constant 0 : i32
    return %c0_i32 : i32
  }
  func.func @transform_7(%arg0: i32) -> (i32, i32, i32) {
    %c0_i32 = arith.constant 0 : i32
    %c0_i32_0 = arith.constant 0 : i32
    %c0_i32_1 = arith.constant 0 : i32
    return %arg0, %c0_i32, %c0_i32_0 : i32, i32, i32
  }
}

</mosaic_0001>

<bundles_post_ra>
// kernel: tpu_custom_call.1
= control target key start
LH: loop header
LB: loop body
LE: loop exit
PB: predicated region body
PF: predicated region fallthrough
CT: control target
= control target key end

     0   :  { %13 = vsyncpa [#allocation4], 0  ;;  %s842_s0 = inlined_call_operand.hbm [shape: f32[8,20], index: 0, kind: input, shape index: {}]   ;;  %s843_s1 = inlined_call_operand.hbm [shape: bf16[20,512], index: 1, kind: input, shape index: {}]   ;;  %s844_s2 = inlined_call_operand.vmem [shape: f32[1,256], index: 2, kind: input, shape index: {}]   ;;  %s845_s3 = inlined_call_operand.hbm [shape: bf16[256,256], index: 3, kind: input, shape index: {}]   ;;  %s846_s4 = inlined_call_operand.vmem [shape: f32[1,256], index: 4, kind: input, shape index: {}]   ;;  %s847_s5 = inlined_call_operand.vmem [shape: f32[1,256], index: 5, kind: input, shape index: {}]   ;;  %s848_s6 = inlined_call_operand.<no memory space> [shape: f32[1], index: 6, kind: input, shape index: {}]   ;;  %s849_s7 = inlined_call_operand.hbm [shape: f32[1,1,8], index: 7, kind: output, shape index: {}]  }
   0x1   :  { %14 = vsyncpa [#allocation7], 0 }
   0x2   :  { %15 = vsyncpa [#allocation5], 0  ;;  %s723_s24 = smov [#allocation6]   ;;  %s629_s28 = scalar_lea.hbm %s843_s1, 768 }
   0x3   :  { %s31_s25 = sshll.u32 %s723_s24, 4  ;;  %p630_p0 = scmp.ne.s32.totalorder %s843_s1, %s629_s28  ;;  %s32_s25 = int_to_ptr.vmem [resolvable:$true] %s31_s25 }
   0x4   :  { %p633_p1 = scmp.lt.u32.totalorder %s629_s28, %s843_s1 }
   0x6   :  { %p635_p2 = pnand %p633_p1, %p630_p0 }
   0x8   :  { %638 = shalt.err (!%p635_p2)
}
   0x9   :  { %s639_s10 = scalar_lea.vmem %s32_s25, 768  ;;  %p644_p4 = scmp.lt.s32.totalorder %s32_s25, %s32_s25 }
   0xa   :  { %p640_p3 = scmp.ne.s32.totalorder %s32_s25, %s639_s10  ;;  %p645_p5 = scmp.lt.s32.totalorder %s639_s10, %s639_s10 }
   0xc   :  { %p646_p6 = por %p645_p5, %p644_p4 }
   0xe   :  { %p647_p7 = pnand %p646_p6, %p640_p3 }
  0x10   :  { %650 = shalt.err (!%p647_p7)
}
  0x11   :  { %s724_s11 = smov 256   ;;  %s725_s12 = smov 16  }
  0x12   :  { %37 = dma.hbm_to_vmem [thread:$0]  %s843_s1, 768, %s32_s25, [#allocation7], %s724_s11, %s724_s11, %s725_s12  }
  0x13   :  { %s726_s15 = smov [#allocation3]   ;;  %s727_s17 = smov [#allocation8]  }
  0x14   :  { %s22_s16 = sshll.u32 %s726_s15, 4  ;;  %s45_s18 = sshll.u32 %s727_s17, 4  ;;  %s23_s16 = int_to_ptr.vmem [resolvable:$true] %s22_s16  ;;  %s46_s18 = int_to_ptr.vmem [resolvable:$true] %s45_s18 }
  0x15   :  { %s651_s21 = scalar_lea.hbm %s842_s0, 128 }
  0x16   :  { %p652_p8 = scmp.ne.s32.totalorder %s842_s0, %s651_s21  ;;  %p655_p9 = scmp.lt.u32.totalorder %s651_s21, %s842_s0 }
  0x18   :  { %p657_p10 = pnand %p655_p9, %p652_p8 }
  0x1a   :  { %660 = shalt.err (!%p657_p10)
}
  0x1b   :  { %s661_s1 = scalar_lea.vmem %s23_s16, 128  ;;  %p666_p12 = scmp.lt.s32.totalorder %s23_s16, %s23_s16 }
  0x1c   :  { %p662_p11 = scmp.ne.s32.totalorder %s23_s16, %s661_s1  ;;  %p667_p13 = scmp.lt.s32.totalorder %s661_s1, %s661_s1 }
  0x1e   :  { %p668_p0 = por %p667_p13, %p666_p12 }
  0x20   :  { %p669_p1 = pnand %p668_p0, %p662_p11 }
  0x22   :  { %672 = shalt.err (!%p669_p1)
}
  0x23   :  { %25 = dma.hbm_to_vmem [thread:$0]  %s842_s0, 128, %s23_s16, [#allocation4]  }
  0x24   :  { %s673_s30 = scalar_lea.hbm %s845_s3, 4096 }
  0x25   :  { %p674_p2 = scmp.ne.s32.totalorder %s845_s3, %s673_s30  ;;  %p677_p3 = scmp.lt.u32.totalorder %s673_s30, %s845_s3 }
  0x27   :  { %p679_p4 = pnand %p677_p3, %p674_p2 }
  0x29   :  { %682 = shalt.err (!%p679_p4)
}
  0x2a   :  { %s683_s12 = scalar_lea.vmem %s46_s18, 4096  ;;  %p688_p6 = scmp.lt.s32.totalorder %s46_s18, %s46_s18 }
  0x2b   :  { %p684_p5 = scmp.ne.s32.totalorder %s46_s18, %s683_s12  ;;  %p689_p7 = scmp.lt.s32.totalorder %s683_s12, %s683_s12 }
  0x2d   :  { %p690_p8 = por %p689_p7, %p688_p6 }
  0x2f   :  { %p691_p9 = pnand %p690_p8, %p684_p5 }
  0x31   :  { %694 = shalt.err (!%p691_p9)
}
  0x32   :  { %s728_s0 = smov 128   ;;  %s729_s13 = smov 8  }
  0x33   :  { %51 = dma.hbm_to_vmem [thread:$0]  %s845_s3, 4096, %s46_s18, [#allocation7], %s728_s0, %s728_s0, %s729_s13  }
  0x34   :  { %717 = dma.done.wait [#allocation4], 128  }
  0x35   :  { %718 = vsyncadd [#allocation4], 4294967168 }
  0x36   :  { %719 = dma.done.wait [#allocation7], 4864  }
  0x37   :  { %720 = vsyncadd [#allocation7], 4294962432  ;;  %v730_v0 = vmov 0   ;;  %v571_v1 = vld [vmem:[#allocation6 + $0x4] ss:$16 sps:$4 sm:$0xff]   ;;  %vm110_vm0 = vcmask 1041408   ;;  %v207_v47 = vlaneseq }
  0x38   :  { %155 = vmatprep.mubr.bf16.mxu1 %v730_v0  ;;  %v573_v2 = vld [vmem:[#allocation6] ss:$16 sps:$4 sm:$0xff]   ;;  %v68_v4 = vld [vmem:[#allocation3] sm:$0xff]  ;;  %123 = vmatprep.subr.bf16.mxu1 %v571_v1  ;;  %v579_v10 = vld [vmem:[#allocation8 + $0x14] ss:$8 sps:$4 sm:$0xff]   ;;  %vm106_vm1 = vcmask 162816  }
  0x39   :  { %v74_v3 = vld [vmem:[#allocation6 + $0x20] sm:$0x33]  ;;  %v576_v7 = vld [vmem:[#allocation8 + $0x4] ss:$8 sps:$4 sm:$0xff]   ;;  %124 = vmatpush1.bf16.msra.mxu1 %v573_v2  ;;  %v578_v8 = vld [vmem:[#allocation8] ss:$8 sps:$4 sm:$0xff]   ;;  %v810_v12 = vpack.c.bf16 %v68_v4, %v68_v4 }
  0x3a   :  { %v523_v5 = vcombine.high %v74_v3, %v74_v3  ;;  %v522_v6 = vcombine.low %v74_v3, %v74_v3  ;;  %415 = vmatprep.subr.bf16.mxu0 %v576_v7  ;;  %v581_v11 = vld [vmem:[#allocation8 + $0x10] ss:$8 sps:$4 sm:$0xff]   ;;  %v582_v13 = vld [vmem:[#allocation8 + $0x24] ss:$8 sps:$4 sm:$0xff]   ;;  %v584_v14 = vld [vmem:[#allocation8 + $0x20] ss:$8 sps:$4 sm:$0xff]  }
  0x3b   :  { %416 = vmatpush1.bf16.msra.mxu0 %v578_v8  ;;  %v585_v15 = vld [vmem:[#allocation8 + $0x34] ss:$8 sps:$4 sm:$0xff]   ;;  %v587_v16 = vld [vmem:[#allocation8 + $0x30] ss:$8 sps:$4 sm:$0xff]   ;;  %v588_v17 = vld [vmem:[#allocation8 + $0x44] ss:$8 sps:$4 sm:$0xff]  }
  0x3c   :  { %526 = vmatprep.subr.msk.bf16.mxu1 %vm110_vm0, %v523_v5  ;;  %v112_v9 = vsel %vm110_vm0, %v522_v6, 0  ;;  %417 = vmatprep.subr.bf16.mxu0 %v579_v10  ;;  %v590_v18 = vld [vmem:[#allocation8 + $0x40] ss:$8 sps:$4 sm:$0xff]   ;;  %v591_v19 = vld [vmem:[#allocation8 + $0x54] ss:$8 sps:$4 sm:$0xff]   ;;  %v208_v48 = vshrl.u32 %v207_v47, 7 }
  0x3d   :  { %126 = vmatpush1.bf16.msra.mxu1 %v112_v9  ;;  %v593_v20 = vld [vmem:[#allocation8 + $0x50] ss:$8 sps:$4 sm:$0xff]   ;;  %v594_v21 = vld [vmem:[#allocation8 + $0x64] ss:$8 sps:$4 sm:$0xff]   ;;  %v596_v24 = vld [vmem:[#allocation8 + $0x60] ss:$8 sps:$4 sm:$0xff]  }
  0x3e   :  { %v617_v22 = vld [vmem:[#allocation6 + $0x8] ss:$16 sps:$4 sm:$0xff]   ;;  %v619_v23 = vld [vmem:[#allocation6 + $0xc] ss:$16 sps:$4 sm:$0xff]   ;;  %v209_v49 = vsub.s32 0, %v208_v48  ;;  %v213_v51 = vsub.s32 1, %v208_v48 }
  0x3f   :  { %418 = vmatpush1.bf16.msra.mxu0 %v581_v11  ;;  %164 = vmatprep.subr.bf16.mxu1 %v619_v23  ;;  %v597_v25 = vld [vmem:[#allocation8 + $0x74] ss:$8 sps:$4 sm:$0xff]   ;;  %v599_v26 = vld [vmem:[#allocation8 + $0x70] ss:$8 sps:$4 sm:$0xff]   ;;  %v600_v27 = vld [vmem:[#allocation8 + $0x84] ss:$8 sps:$4 sm:$0xff]  }
  0x40   :  { %527 = vmatmul.mubr.msk.bf16.vlgmr.msra.gmra.mrb[0].mxu1 %vm106_vm1, %v810_v12  ;;  %419 = vmatprep.subr.bf16.mxu0 %v582_v13  ;;  %v602_v28 = vld [vmem:[#allocation8 + $0x80] ss:$8 sps:$4 sm:$0xff]   ;;  %v603_v29 = vld [vmem:[#allocation8 + $0x94] ss:$8 sps:$4 sm:$0xff]   ;;  %v605_v30 = vld [vmem:[#allocation8 + $0x90] ss:$8 sps:$4 sm:$0xff]  }
  0x41   :  { %196 = vmatprep.mubr.bf16.mxu1 %v730_v0  ;;  %165 = vmatpush1.bf16.msra.mxu1 %v617_v22  ;;  %v606_v31 = vld [vmem:[#allocation8 + $0xa4] ss:$8 sps:$4 sm:$0xff]   ;;  %v608_v32 = vld [vmem:[#allocation8 + $0xa0] ss:$8 sps:$4 sm:$0xff]   ;;  %v609_v33 = vld [vmem:[#allocation8 + $0xb4] ss:$8 sps:$4 sm:$0xff]  }
  0x42   :  { %v611_v34 = vld [vmem:[#allocation8 + $0xb0] ss:$8 sps:$4 sm:$0xff]   ;;  %v612_v35 = vld [vmem:[#allocation8 + $0xc4] ss:$8 sps:$4 sm:$0xff]   ;;  %v614_v36 = vld [vmem:[#allocation8 + $0xc0] ss:$8 sps:$4 sm:$0xff]  }
  0x43   :  { %420 = vmatpush1.bf16.msra.mxu0 %v584_v14  ;;  %v615_v37 = vld [vmem:[#allocation8 + $0xd4] ss:$8 sps:$4 sm:$0xff]   ;;  %v620_v38 = vld [vmem:[#allocation8 + $0xd0] ss:$8 sps:$4 sm:$0xff]   ;;  %v621_v39 = vld [vmem:[#allocation8 + $0xe4] ss:$8 sps:$4 sm:$0xff]  }
  0x44   :  { %421 = vmatprep.subr.bf16.mxu0 %v585_v15  ;;  %v75_v40 = vld [vmem:[#allocation6 + $0x28] sm:$0x33]  ;;  %v624_v42 = vld [vmem:[#allocation8 + $0xe0] ss:$8 sps:$4 sm:$0xff]   ;;  %v494_v23 = vand.u32 127, %v207_v47  ;;  %vm500_vm2 = vcmask 57344  }
  0x45   :  { %v525_v41 = vcombine.high %v75_v40, %v75_v40  ;;  %v524_v43 = vcombine.low %v75_v40, %v75_v40  ;;  %v626_v45 = vld [vmem:[#allocation8 + $0xf4] ss:$8 sps:$4 sm:$0xff]   ;;  %v628_v46 = vld [vmem:[#allocation8 + $0xf0] ss:$8 sps:$4 sm:$0xff]   ;;  %v205_v50 = vld [vmem:[%s844_s2] sm:$0x3] }
  0x46   :  { %v210_v52 = vrot.slane %v205_v50, %v209_v49  ;;  %v214_v53 = vrot.slane %v205_v50, %v213_v51  ;;  %v456_v4 = vld [vmem:[%s846_s4] sm:$0x3] }
  0x47   :  { %422 = vmatpush1.bf16.msra.mxu0 %v587_v16  ;;  %528 = vmatprep.subr.msk.bf16.mxu1 %vm110_vm0, %v525_v41  ;;  %v118_v44 = vsel %vm110_vm0, %v524_v43, 0  ;;  %v461_v5 = vrot.slane %v456_v4, %v209_v49  ;;  %v465_v7 = vrot.slane %v456_v4, %v213_v51  ;;  %v472_v8 = vld [vmem:[%s847_s5] sm:$0x3]  ;;  %s731_s5 = smov [#allocation9]  }
  0x48   :  { %423 = vmatprep.subr.bf16.mxu0 %v588_v17  ;;  %167 = vmatpush1.bf16.msra.mxu1 %v118_v44  ;;  %v477_v15 = vrot.slane %v472_v8, %v209_v49  ;;  %v481_v17 = vrot.slane %v472_v8, %v213_v51  ;;  %s508_s21 = sshll.u32 %s731_s5, 4  ;;  %s509_s21 = int_to_ptr.vmem [resolvable:$true] %s508_s21 }
  0x49   :  { %s695_s22 = scalar_lea.vmem %s509_s21, 16  ;;  %s699_s23 = scalar_lea.vmem %s509_s21, 32 }
  0x4a   :  { %p696_p10 = scmp.ne.s32.totalorder %s509_s21, %s695_s22  ;;  %p700_p11 = scmp.lt.s32.totalorder %s509_s21, %s509_s21 }
  0x4b   :  { %424 = vmatpush1.bf16.msra.mxu0 %v590_v18  ;;  %529 = vmatmul.mubr.msk.bf16.vlgmr.msra.gmra.mrb[4].mxu1 %vm106_vm1, %v810_v12  ;;  %p701_p12 = scmp.lt.s32.totalorder %s699_s23, %s695_s22 }
  0x4c   :  { %425 = vmatprep.subr.bf16.mxu0 %v591_v19 }
  0x4d   :  { %p702_p13 = por %p701_p12, %p700_p11 }
  0x4f   :  { %426 = vmatpush1.bf16.msra.mxu0 %v593_v20  ;;  %p703_p0 = pnand %p702_p13, %p696_p10 }
  0x50   :  { %427 = vmatprep.subr.bf16.mxu0 %v594_v21 }
  0x53   :  { %428 = vmatpush1.bf16.msra.mxu0 %v596_v24  ;;  %v490_v24 = vstv %s848_s6 }
  0x54   :  { %429 = vmatprep.subr.bf16.mxu0 %v597_v25  ;;  %v497_v25 = vsub.s32 %v494_v23, %v208_v48 }
  0x57   :  { %430 = vmatpush1.bf16.msra.mxu0 %v599_v26 }
  0x58   :  { %431 = vmatprep.subr.bf16.mxu0 %v600_v27 }
  0x5b   :  { %432 = vmatpush1.bf16.msra.mxu0 %v602_v28 }
  0x5c   :  { %433 = vmatprep.subr.bf16.mxu0 %v603_v29 }
  0x5f   :  { %434 = vmatpush1.bf16.msra.mxu0 %v605_v30 }
  0x60   :  { %435 = vmatprep.subr.bf16.mxu0 %v606_v31 }
  0x63   :  { %436 = vmatpush1.bf16.msra.mxu0 %v608_v32 }
  0x64   :  { %437 = vmatprep.subr.bf16.mxu0 %v609_v33 }
  0x67   :  { %438 = vmatpush1.bf16.msra.mxu0 %v611_v34 }
  0x68   :  { %439 = vmatprep.subr.bf16.mxu0 %v612_v35 }
  0x6b   :  { %440 = vmatpush1.bf16.msra.mxu0 %v614_v36 }
  0x6c   :  { %441 = vmatprep.subr.bf16.mxu0 %v615_v37 }
  0x6f   :  { %442 = vmatpush1.bf16.msra.mxu0 %v620_v38 }
  0x70   :  { %443 = vmatprep.subr.bf16.mxu0 %v621_v39 }
  0x73   :  { %444 = vmatpush1.bf16.msra.mxu0 %v624_v42 }
  0x74   :  { %445 = vmatprep.subr.bf16.mxu0 %v626_v45 }
  0x77   :  { %446 = vmatpush1.bf16.msra.mxu0 %v628_v46 }
 0x113   :  { %v157_v54 = vpop.f32.mrb[0].mxu1 }
 0x114   :  { %v217_v55 = vadd.f32 %v210_v52, %v157_v54  ;;  %v159_v56 = vpop.f32.mrb[1].mxu1 }
 0x115   :  { %v218_v57 = vadd.f32 %v214_v53, %v159_v56  ;;  %v161_v58 = vpop.f32.mrb[2].mxu1 }
 0x116   :  { %v219_v59 = vmax.f32 %v217_v55, 0.0  ;;  %v162_v60 = vpop.f32.mrb[3].mxu1 }
 0x117   :  { %v220_v61 = vmax.f32 %v218_v57, 0.0 }
 0x118   :  { %v221_v63 = vpack.c.bf16 %v219_v59, %v219_v59 }
 0x119   :  { %v222_v62 = vpack.c.bf16 %v220_v61, %v220_v61 }
 0x11b   :  { %447 = vmatprep.mubr.bf16.mxu0 %v222_v62 }
 0x11c   :  { %448 = vmatmul.mubr.bf16.vlgmr.msra.gmra.mrb[0].mxu0 %v221_v63 }
 0x11e   :  { %v198_v0 = vpop.f32.mrb[4].mxu1 }
 0x11f   :  { %v200_v1 = vpop.f32.mrb[5].mxu1 }
 0x120   :  { %v202_v2 = vpop.f32.mrb[6].mxu1 }
 0x121   :  { %v203_v3 = vpop.f32.mrb[7].mxu1 }
 0x1ef   :  { %v449_v6 = vpop.f32.mrb[0].mxu0 }
 0x1f0   :  { %v450_v9 = vadd.f32 %v449_v6, %v198_v0  ;;  %v451_v10 = vpop.f32.mrb[1].mxu0 }
 0x1f1   :  { %v452_v11 = vadd.f32 %v451_v10, %v200_v1  ;;  %v453_v12 = vpop.f32.mrb[2].mxu0 }
 0x1f2   :  { %v468_v13 = vadd.f32 %v461_v5, %v450_v9  ;;  %v454_v14 = vpop.f32.mrb[3].mxu0 }
 0x1f3   :  { %v469_v16 = vadd.f32 %v465_v7, %v452_v11 }
 0x1f4   :  { %v470_v18 = vmax.f32 %v468_v13, 0.0 }
 0x1f5   :  { %v471_v19 = vmax.f32 %v469_v16, 0.0 }
 0x1f6   :  { %v484_v20 = vmul.f32 %v477_v15, %v470_v18 }
 0x1f7   :  { %v485_v21 = vmul.f32 %v481_v17, %v471_v19 }
 0x1f9   :  { %v486_v22 = vadd.f32 %v485_v21, %v484_v20 }
 0x1fb   :  { %487 = vadd.xlane.f32.xlu0 %v486_v22 }
 0x288   :  { %v488_v26 = vpop.xlane.xlu0 %487 }
 0x289   :  { %v491_v27 = vadd.f32 %v490_v24, %v488_v26 }
 0x28b   :  { %v498_v28 = vrot.slane %v491_v27, %v497_v25 }
 0x28d   :  { %501 = vst.msk [vmem:[#allocation9] sm:$0x1] %vm500_vm2, %v498_v28 }
 0x28e   :  { %706 = shalt.err (!%p703_p0)
}
 0x28f   :  { %s707_s6 = scalar_lea.hbm %s849_s7, 16 }
 0x290   :  { %p708_p1 = scmp.ne.s32.totalorder %s849_s7, %s707_s6  ;;  %p711_p2 = scmp.lt.u32.totalorder %s707_s6, %s849_s7 }
 0x292   :  { %p713_p3 = pnand %p711_p2, %p708_p1 }
 0x294   :  { %716 = shalt.err (!%p713_p3)
}
 0x295   :  { %511 = dma.vmem_to_hbm [thread:$0]  %s509_s21, 16, %s849_s7, [#allocation5]  }
 0x296   :  { %721 = dma.done.wait [#allocation5], 16  }
 0x297   :  { %722 = vsyncadd [#allocation5], 4294967280 }
 0x298   :  { %515 = vsyncpa [#allocation4], 1 }
 0x299   :  { %516 = vsyncpa [#allocation7], 1 }
 0x29a   :  { %517 = vsyncpa [#allocation5], 1 }

</bundles_post_ra>
